<compile_context>
chip_gen: v5e
topology: v5e:2x2
jax: 0.10.0
libtpu: 0.0.40
codegen_flags: <defaults>
</compile_context>

<pallas_src>
import functools
import math

import jax
import jax.numpy as jnp
from jax.experimental import pallas as pl
from jax.experimental.pallas import tpu as pltpu


# ----------------------------- helpers -----------------------------

def _pick_row_tile(n, max_tile=512):
    for t in (512, 256, 128, 64, 32, 16, 8):
        if t <= max_tile and t <= n and n % t == 0:
            return t
    return n


def _softmax_last(x):
    m = jnp.max(x, axis=-1, keepdims=True)
    e = jnp.exp(x - m)
    return e / jnp.sum(e, axis=-1, keepdims=True)


# ----------------------------- K1: linear (fused QKV projection) -----------------------------

def _linear_kernel(x_ref, w_ref, b_ref, o_ref):
    x = x_ref[...].astype(jnp.float32)
    w = w_ref[...].astype(jnp.float32)
    y = jnp.dot(x, w, preferred_element_type=jnp.float32)
    y = y + b_ref[...].astype(jnp.float32)
    o_ref[...] = y.astype(o_ref.dtype)


def linear(x, w, b, *, out_dtype=jnp.float32):
    n, k = x.shape
    k2, m = w.shape
    assert k == k2
    tm = _pick_row_tile(n)
    return pl.pallas_call(
        _linear_kernel,
        out_shape=jax.ShapeDtypeStruct((n, m), out_dtype),
        grid_spec=pltpu.PrefetchScalarGridSpec(
            num_scalar_prefetch=0,
            grid=(n // tm,),
            in_specs=[
                pl.BlockSpec((tm, k), lambda i: (i, 0)),
                pl.BlockSpec((k, m), lambda i: (0, 0)),
                pl.BlockSpec((1, m), lambda i: (0, 0)),
            ],
            out_specs=pl.BlockSpec((tm, m), lambda i: (i, 0)),
        ),
        compiler_params=pltpu.CompilerParams(dimension_semantics=("parallel",)),
    )(x, w, b.reshape(1, m))


# ----------------------------- K2: summarize + summary attention -----------------------------

def _summary_attn_kernel(q_ref, k_ref, v_ref, o_ref, *, window, scale):
    q = q_ref[0].astype(jnp.float32)          # (S, d)
    k = k_ref[0].astype(jnp.float32)
    v = v_ref[0].astype(jnp.float32)
    s_len, d = q.shape
    m = s_len // window

    qw = q.reshape(m, window, d)
    kw = k.reshape(m, window, d)
    vw = v.reshape(m, window, d)

    s = jnp.einsum('mqd,mkd->mqk', qw, kw, preferred_element_type=jnp.float32) * scale
    p = _softmax_last(s)
    ctx = jnp.einsum('mqk,mkd->mqd', p, vw, preferred_element_type=jnp.float32)
    summary = jnp.mean(ctx, axis=1)           # (m, d); summary tokens are both keys and values

    s2 = jnp.einsum('sd,md->sm', q, summary, preferred_element_type=jnp.float32) * scale
    p2 = _softmax_last(s2)
    ctx2 = jnp.einsum('sm,md->sd', p2, summary, preferred_element_type=jnp.float32)
    o_ref[0] = ctx2.astype(o_ref.dtype)


def summary_attention(q, k, v, *, window):
    bh, s_len, d = q.shape
    scale = 1.0 / math.sqrt(d)
    kern = functools.partial(_summary_attn_kernel, window=window, scale=scale)
    spec = pl.BlockSpec((1, s_len, d), lambda i: (i, 0, 0))
    return pl.pallas_call(
        kern,
        out_shape=jax.ShapeDtypeStruct((bh, s_len, d), jnp.float32),
        grid_spec=pltpu.PrefetchScalarGridSpec(
            num_scalar_prefetch=0,
            grid=(bh,),
            in_specs=[spec, spec, spec],
            out_specs=spec,
        ),
        compiler_params=pltpu.CompilerParams(dimension_semantics=("parallel",)),
    )(q, k, v)


# ----------------------------- K3: sliding-window (local) attention -----------------------------

def _sliding_attn_kernel(q_ref, k0_ref, k1_ref, v0_ref, v1_ref,
                         kmask_ref, qkeep_ref, sumctx_ref, o_ref,
                         *, half_window, seq_len, scale):
    c = pl.program_id(1)
    chunk = q_ref.shape[1]                    # C = 2 * half_window

    q = q_ref[0].astype(jnp.float32) * scale                                   # (C, d)
    k = jnp.concatenate([k0_ref[0], k1_ref[0]], axis=0).astype(jnp.float32)    # (2C, d)
    v = jnp.concatenate([v0_ref[0], v1_ref[0]], axis=0).astype(jnp.float32)    # (2C, d)
    kmask = kmask_ref[...].astype(jnp.float32)                                 # (1, 2C) additive
    keep = qkeep_ref[0].astype(jnp.float32)                                    # (C, 1)

    s = jnp.einsum('qd,kd->qk', q, k, preferred_element_type=jnp.float32)      # (C, 2C)
    s = s + kmask                                                              # -10000 on padded keys

    # band + sequence-bounds validity (torch sets invalid locations to -inf)
    r = jax.lax.broadcasted_iota(jnp.int32, (chunk, 2 * chunk), 0)             # query row in chunk
    t = jax.lax.broadcasted_iota(jnp.int32, (chunk, 2 * chunk), 1)             # key slot in window
    key_pos = c * chunk + t - half_window                                      # absolute key position
    valid = (t >= r) & (t <= r + 2 * half_window) & (key_pos >= 0) & (key_pos < seq_len)
    s = jnp.where(valid, s, jnp.float32(-1e30))

    p = _softmax_last(s)
    ctx = jnp.dot(p, v, preferred_element_type=jnp.float32)                    # (C, d)
    ctx = ctx * keep                                                           # literal masked_fill semantics
    o_ref[0] = (ctx + sumctx_ref[0].astype(jnp.float32)).astype(o_ref.dtype)


def sliding_window_attention(q, k, v, kmask_chunks, qkeep, sum_ctx, *,
                             half_window, num_heads):
    bh, s_len, d = q.shape
    chunk = 2 * half_window
    assert s_len % chunk == 0
    nc = s_len // chunk
    scale = 1.0 / math.sqrt(d)

    # zero-pad K/V by half_window on both sides of the sequence axis so every query chunk's
    # window is covered by exactly two consecutive padded chunks (c and c+1).
    k_pad = jnp.pad(k, ((0, 0), (half_window, half_window), (0, 0)))
    v_pad = jnp.pad(v, ((0, 0), (half_window, half_window), (0, 0)))

    kern = functools.partial(_sliding_attn_kernel, half_window=half_window,
                             seq_len=s_len, scale=scale)

    qidx = lambda bhi, ci: (bhi, ci, 0)
    kidx0 = lambda bhi, ci: (bhi, ci, 0)
    kidx1 = lambda bhi, ci: (bhi, ci + 1, 0)
    midx = lambda bhi, ci: ((bhi // num_heads) * nc + ci, 0)
    keepidx = lambda bhi, ci: (bhi // num_heads, ci, 0)

    return pl.pallas_call(
        kern,
        out_shape=jax.ShapeDtypeStruct((bh, s_len, d), jnp.float32),
        grid_spec=pltpu.PrefetchScalarGridSpec(
            num_scalar_prefetch=0,
            grid=(bh, nc),
            in_specs=[
                pl.BlockSpec((1, chunk, d), qidx),       # q chunk
                pl.BlockSpec((1, chunk, d), kidx0),      # k chunk c   (padded coords)
                pl.BlockSpec((1, chunk, d), kidx1),      # k chunk c+1 (padded coords)
                pl.BlockSpec((1, chunk, d), kidx0),      # v chunk c
                pl.BlockSpec((1, chunk, d), kidx1),      # v chunk c+1
                pl.BlockSpec((1, 2 * chunk), midx),      # additive key mask for this window
                pl.BlockSpec((1, chunk, 1), keepidx),    # query-row keep factor
                pl.BlockSpec((1, chunk, d), qidx),       # summary-attention context to add
            ],
            out_specs=pl.BlockSpec((1, chunk, d), qidx),
        ),
        compiler_params=pltpu.CompilerParams(
            dimension_semantics=("parallel", "parallel")),
    )(q, k_pad, k_pad, v_pad, v_pad, kmask_chunks, qkeep, sum_ctx)


# ----------------------------- K4: output dense + residual + LayerNorm -----------------------------

def _output_ln_kernel(x_ref, w_ref, b_ref, res_ref, g_ref, bb_ref, o_ref, *, eps):
    x = x_ref[...].astype(jnp.float32)
    w = w_ref[...].astype(jnp.float32)
    y = jnp.dot(x, w, preferred_element_type=jnp.float32)
    y = y + b_ref[...].astype(jnp.float32) + res_ref[...].astype(jnp.float32)
    mu = jnp.mean(y, axis=-1, keepdims=True)
    yc = y - mu
    var = jnp.mean(yc * yc, axis=-1, keepdims=True)
    y = yc * jax.lax.rsqrt(var + eps)
    y = y * g_ref[...].astype(jnp.float32) + bb_ref[...].astype(jnp.float32)
    o_ref[...] = y.astype(o_ref.dtype)


def output_dense_layernorm(x, w, b, residual, gamma, beta, *, eps):
    n, k = x.shape
    _, h = w.shape
    tm = _pick_row_tile(n)
    kern = functools.partial(_output_ln_kernel, eps=eps)
    return pl.pallas_call(
        kern,
        out_shape=jax.ShapeDtypeStruct((n, h), jnp.float32),
        grid_spec=pltpu.PrefetchScalarGridSpec(
            num_scalar_prefetch=0,
            grid=(n // tm,),
            in_specs=[
                pl.BlockSpec((tm, k), lambda i: (i, 0)),
                pl.BlockSpec((k, h), lambda i: (0, 0)),
                pl.BlockSpec((1, h), lambda i: (0, 0)),
                pl.BlockSpec((tm, h), lambda i: (i, 0)),
                pl.BlockSpec((1, h), lambda i: (0, 0)),
                pl.BlockSpec((1, h), lambda i: (0, 0)),
            ],
            out_specs=pl.BlockSpec((tm, h), lambda i: (i, 0)),
        ),
        compiler_params=pltpu.CompilerParams(dimension_semantics=("parallel",)),
    )(x, w, b.reshape(1, h), residual, gamma.reshape(1, h), beta.reshape(1, h))


# ----------------------------- top-level module -----------------------------

def summaryformer_attention(hidden_states, attention_mask, params, *,
                            num_heads, summary_window, local_window,
                            layer_norm_eps=1e-12):
    b, s, h = hidden_states.shape
    d = h // num_heads
    half_w = local_window // 2
    assert local_window > 0 and local_window % 2 == 0
    assert s % summary_window == 0 and s % local_window == 0

    x2d = hidden_states.reshape(b * s, h)

    # fused QKV projection (weights kept in native dtype; fp32 accumulation in-kernel)
    wqkv = jnp.concatenate([params['wq'].T, params['wk'].T, params['wv'].T], axis=1)   # (h, 3h)
    bqkv = jnp.concatenate([params['bq'], params['bk'], params['bv']], axis=0)         # (3h,)
    qkv = linear(x2d, wqkv, bqkv)                                                      # (b*s, 3h)

    def to_heads(z):
        return (z.reshape(b, s, num_heads, d)
                 .transpose(0, 2, 1, 3)
                 .reshape(b * num_heads, s, d))

    qh = to_heads(qkv[:, :h])
    kh = to_heads(qkv[:, h:2 * h])
    vh = to_heads(qkv[:, 2 * h:])

    # branch 1: summarize + attend over summary tokens
    sum_ctx = summary_attention(qh, kh, vh, window=summary_window)                     # (b*nh, s, d)

    # branch 2: sliding-window local attention (literal module mask semantics:
    #  * additive -10000 on keys where attention_mask == 0
    #  * probs rows zeroed where attention_mask != 0)
    mask_bool = attention_mask != 0
    kmask = jnp.where(mask_bool, 0.0, -10000.0).astype(jnp.float32)                    # (b, s)
    chunk = local_window
    nc = s // chunk
    kmask_pad = jnp.pad(kmask, ((0, 0), (half_w, half_w)), constant_values=-10000.0)   # (b, s+chunk)
    gather_idx = jnp.arange(nc)[:, None] * chunk + jnp.arange(2 * chunk)[None, :]
    kmask_chunks = kmask_pad[:, gather_idx].reshape(b * nc, 2 * chunk)                 # (b*nc, 2*chunk)
    qkeep = jnp.where(mask_bool, 0.0, 1.0).astype(jnp.float32)[..., None]              # (b, s, 1)

    attn = sliding_window_attention(qh, kh, vh, kmask_chunks, qkeep, sum_ctx,
                                    half_window=half_w, num_heads=num_heads)           # (b*nh, s, d)

    self_out = (attn.reshape(b, num_heads, s, d)
                    .transpose(0, 2, 1, 3)
                    .reshape(b * s, h))

    # SummaryformerSelfOutput: dense + dropout(identity) + residual + LayerNorm
    out = output_dense_layernorm(self_out, params['wo'].T, params['bo'], x2d,
                                 params['gamma'], params['beta'], eps=layer_norm_eps)
    return out.reshape(b, s, h)


# ----------------------------- pure-JAX reference -----------------------------

def _reference(hidden_states, attention_mask, params, *, num_heads,
               summary_window, local_window, layer_norm_eps):
    b, s, h = hidden_states.shape
    d = h // num_heads
    w = local_window // 2
    scale = 1.0 / math.sqrt(d)
    hp = "highest"

    def lin(x, wt, bias):
        return jnp.einsum('bsh,oh->bso', x, wt, precision=hp) + bias

    q = lin(hidden_states, params['wq'], params['bq'])
    k = lin(hidden_states, params['wk'], params['bk'])
    v = lin(hidden_states, params['wv'], params['bv'])

    def heads(z):
        return z.reshape(b, s, num_heads, d).transpose(0, 2, 1, 3)   # (b, nh, s, d)

    qh, kh, vh = heads(q), heads(k), heads(v)

    # summarize
    m = s // summary_window
    qw = qh.reshape(b, num_heads, m, summary_window, d)
    kw = kh.reshape(b, num_heads, m, summary_window, d)
    vw = vh.reshape(b, num_heads, m, summary_window, d)
    ssc = jnp.einsum('bhmqd,bhmkd->bhmqk', qw, kw, precision=hp) * scale
    spr = jax.nn.softmax(ssc, axis=-1)
    sctx = jnp.einsum('bhmqk,bhmkd->bhmqd', spr, vw, precision=hp).mean(axis=3)   # (b, nh, m, d)

    s2 = jnp.einsum('bhqd,bhmd->bhqm', qh, sctx, precision=hp) * scale
    p2 = jax.nn.softmax(s2, axis=-1)
    context_layer = jnp.einsum('bhqm,bhmd->bhqd', p2, sctx, precision=hp)

    # sliding window attention, dense banded reference
    scores = jnp.einsum('bhid,bhjd->bhij', qh * scale, kh, precision=hp)
    i = jnp.arange(s)[:, None]
    j = jnp.arange(s)[None, :]
    band = jnp.abs(i - j) <= w
    keymask = jnp.where(attention_mask != 0, 0.0, -10000.0)
    scores = scores + keymask[:, None, None, :]
    scores = jnp.where(band[None, None], scores, -1e30)
    probs = jax.nn.softmax(scores, axis=-1)
    probs = jnp.where((attention_mask != 0)[:, None, :, None], 0.0, probs)
    attn = jnp.einsum('bhij,bhjd->bhid', probs, vh, precision=hp)

    self_out = (context_layer + attn).transpose(0, 2, 1, 3).reshape(b, s, h)

    y = jnp.einsum('bsh,oh->bso', self_out, params['wo'], precision=hp) + params['bo']
    y = y + hidden_states
    mu = jnp.mean(y, axis=-1, keepdims=True)
    var = jnp.mean((y - mu) ** 2, axis=-1, keepdims=True)
    return (y - mu) * jax.lax.rsqrt(var + layer_norm_eps) * params['gamma'] + params['beta']


# ----------------------------- test -----------------------------

if __name__ == "__main__":
    batch, seq, hidden = 2, 16, 32
    num_heads = 4
    summary_window = 8
    local_window = 8            # one-sided window w = 4
    layer_norm_eps = 1e-12

    key = jax.random.PRNGKey(0)
    ks = jax.random.split(key, 12)
    wscale = 1.0 / math.sqrt(hidden)
    params = {
        'wq': wscale * jax.random.normal(ks[0], (hidden, hidden), jnp.float32),
        'bq': 0.02 * jax.random.normal(ks[1], (hidden,), jnp.float32),
        'wk': wscale * jax.random.normal(ks[2], (hidden, hidden), jnp.float32),
        'bk': 0.02 * jax.random.normal(ks[3], (hidden,), jnp.float32),
        'wv': wscale * jax.random.normal(ks[4], (hidden, hidden), jnp.float32),
        'bv': 0.02 * jax.random.normal(ks[5], (hidden,), jnp.float32),
        'wo': wscale * jax.random.normal(ks[6], (hidden, hidden), jnp.float32),
        'bo': 0.02 * jax.random.normal(ks[7], (hidden,), jnp.float32),
        'gamma': jnp.ones((hidden,), jnp.float32),
        'beta': jnp.zeros((hidden,), jnp.float32),
    }
    hidden_states = jax.random.normal(ks[8], (batch, seq, hidden), jnp.float32)
    attention_mask = jnp.ones((batch, seq), jnp.int32)
    attention_mask = attention_mask.at[0, 13:].set(0)
    attention_mask = attention_mask.at[1, :3].set(0)

    out = summaryformer_attention(
        hidden_states, attention_mask, params,
        num_heads=num_heads, summary_window=summary_window,
        local_window=local_window, layer_norm_eps=layer_norm_eps)
    out = jax.block_until_ready(out)

    ref = _reference(hidden_states, attention_mask, params,
                     num_heads=num_heads, summary_window=summary_window,
                     local_window=local_window, layer_norm_eps=layer_norm_eps)

    assert out.shape == (batch, seq, hidden)
    assert bool(jnp.all(jnp.isfinite(out)))
    assert bool(jnp.allclose(out, ref, atol=3e-2, rtol=3e-2)), \
        float(jnp.max(jnp.abs(out - ref)))

    print("KERNEL_OK")
</pallas_src>

<mosaic_0001>
module attributes {stable_mosaic.version = 11 : i64} {
  func.func @_linear_kernel(%arg0: i32, %arg1: memref<32x32xf32, #tpu.memory_space<vmem>>, %arg2: memref<32x96xf32, #tpu.memory_space<vmem>>, %arg3: memref<1x96xf32, #tpu.memory_space<vmem>>, %arg4: memref<32x96xf32, #tpu.memory_space<vmem>>) attributes {dimension_semantics = [#tpu.dimension_semantics<parallel>], iteration_bounds = array<i64: 1>, scalar_prefetch = 0 : i64, scratch_operands = 0 : i64, tpu.core_type = #tpu.core_type<tc>, window_params = [{transform_indices = @transform_0, window_bounds = array<i64: 32, 32>}, {pipeline_mode = #tpu.pipeline_mode<synchronous>, transform_indices = @transform_1, window_bounds = array<i64: 32, 96>}, {pipeline_mode = #tpu.pipeline_mode<synchronous>, transform_indices = @transform_2, window_bounds = array<i64: 1, 96>}, {transform_indices = @transform_3, window_bounds = array<i64: 32, 96>}]} {
    %c0 = arith.constant 0 : index
    %c0_0 = arith.constant 0 : index
    %0 = vector.load %arg1[%c0, %c0_0] : memref<32x32xf32, #tpu.memory_space<vmem>>, vector<32x32xf32>
    %c0_1 = arith.constant 0 : index
    %c0_2 = arith.constant 0 : index
    %1 = vector.load %arg2[%c0_1, %c0_2] : memref<32x96xf32, #tpu.memory_space<vmem>>, vector<32x96xf32>
    %cst = arith.constant dense<0.000000e+00> : vector<32x96xf32>
    %2 = tpu.matmul %0, %1, %cst {dimension_numbers = #tpu.dot_dimension_numbers<[1], [0], [0], [1], [0, 0, 1, 1], [], []>} : vector<32x32xf32>, vector<32x96xf32>, vector<32x96xf32> -> vector<32x96xf32>
    %c0_3 = arith.constant 0 : index
    %c0_4 = arith.constant 0 : index
    %3 = vector.load %arg3[%c0_3, %c0_4] : memref<1x96xf32, #tpu.memory_space<vmem>>, vector<1x96xf32>
    %4 = vector.broadcast %3 : vector<1x96xf32> to vector<32x96xf32>
    %5 = arith.addf %2, %4 : vector<32x96xf32>
    %c0_5 = arith.constant 0 : index
    %c0_6 = arith.constant 0 : index
    %6 = vector.load %arg4[%c0_5, %c0_6] : memref<32x96xf32, #tpu.memory_space<vmem>>, vector<32x96xf32>
    tpu.vector_store %arg4[%c0_5, %c0_6], %5 {strides = array<i32>} : memref<32x96xf32, #tpu.memory_space<vmem>>, vector<32x96xf32>,
    return
  }
  func.func @transform_0(%arg0: i32) -> (i32, i32) {
    %c0_i32 = arith.constant 0 : i32
    %c0_i32_0 = arith.constant 0 : i32
    return %arg0, %c0_i32 : i32, i32
  }
  func.func @transform_1(%arg0: i32) -> (i32, i32) {
    %c0_i32 = arith.constant 0 : i32
    %c0_i32_0 = arith.constant 0 : i32
    %c0_i32_1 = arith.constant 0 : i32
    return %c0_i32, %c0_i32_0 : i32, i32
  }
  func.func @transform_2(%arg0: i32) -> (i32, i32) {
    %c0_i32 = arith.constant 0 : i32
    %c0_i32_0 = arith.constant 0 : i32
    %c0_i32_1 = arith.constant 0 : i32
    return %c0_i32, %c0_i32_0 : i32, i32
  }
  func.func @transform_3(%arg0: i32) -> (i32, i32) {
    %c0_i32 = arith.constant 0 : i32
    %c0_i32_0 = arith.constant 0 : i32
    return %arg0, %c0_i32 : i32, i32
  }
}

</mosaic_0001>

<bundles_post_ra>
// kernel: tpu_custom_call.1
= control target key start
LH: loop header
LB: loop body
LE: loop exit
PB: predicated region body
PF: predicated region fallthrough
CT: control target
= control target key end

     0   :  { %8 = vsyncpa [#allocation3], 0  ;;  %s276_s0 = inlined_call_operand.hbm [shape: f32[32,32], index: 0, kind: input, shape index: {}]   ;;  %s277_s1 = inlined_call_operand.hbm [shape: f32[32,96], index: 1, kind: input, shape index: {}]   ;;  %s278_s2 = inlined_call_operand.vmem [shape: f32[1,96], index: 2, kind: input, shape index: {}]   ;;  %s279_s3 = inlined_call_operand.hbm [shape: f32[32,96], index: 3, kind: output, shape index: {}]  }
   0x1   :  { %9 = vsyncpa [#allocation6], 0 }
   0x2   :  { %10 = vsyncpa [#allocation4], 0  ;;  %s15_s14 = sshll.u32 %s276_s0, 4  ;;  %s226_s15 = smov [#allocation2]   ;;  %s16_s14 = int_to_ptr.hbm [resolvable:$true] %s15_s14 }
   0x3   :  { %s17_s16 = sshll.u32 %s226_s15, 4  ;;  %s28_s19 = sshll.u32 %s277_s1, 4  ;;  %s18_s16 = int_to_ptr.vmem [resolvable:$true] %s17_s16  ;;  %s29_s19 = int_to_ptr.hbm [resolvable:$true] %s28_s19 }
   0x4   :  { %s227_s20 = smov 128   ;;  %s228_s21 = smov 8  }
   0x5   :  { %23 = dma.hbm_to_vmem [thread:$0]  %s16_s14, 512, %s18_s16, [#allocation3], %s227_s20, %s227_s20, %s228_s21  }
   0x6   :  { %s229_s22 = smov [#allocation5]  }
   0x7   :  { %s30_s23 = sshll.u32 %s229_s22, 4  ;;  %s31_s23 = int_to_ptr.vmem [resolvable:$true] %s30_s23 }
   0x8   :  { %36 = dma.hbm_to_vmem [thread:$0]  %s29_s19, 512, %s31_s23, [#allocation6], %s227_s20, %s227_s20, %s228_s21  }
   0x9   :  { %220 = dma.done.wait [#allocation3], 512  }
   0xa   :  { %221 = vsyncadd [#allocation3], 4294966784 }
   0xb   :  { %222 = dma.done.wait [#allocation6], 512  }
   0xc   :  { %223 = vsyncadd [#allocation6], 4294966784  ;;  %v54_v0 = vld [vmem:[#allocation5 + $0x18] sm:$0xff]  ;;  %v53_v1 = vld [vmem:[#allocation5 + $0x10] sm:$0xff]  ;;  %vm59_vm0 = vcmask 261120   ;;  %vm101_vm1 = vcmask 785408  }
   0xd   :  { %131 = vmatpush.msra.mxu2 %v54_v0  ;;  %132 = vmatpush.msra.mxu3 %v54_v0  ;;  %v52_v2 = vld [vmem:[#allocation5 + $0x8] sm:$0xff]  ;;  %v51_v3 = vld [vmem:[#allocation5] sm:$0xff]  ;;  %v49_v4 = vld [vmem:[#allocation2 + $0x10] sm:$0xff]  ;;  %s230_s24 = smov [#allocation7]   ;;  %s112_s28 = sshll.u32 %s279_s3, 4  ;;  %s113_s28 = int_to_ptr.hbm [resolvable:$true] %s112_s28 }
   0xe   :  { %84 = vmatpush.msra.mxu0 %v54_v0  ;;  %130 = vmatpush.msra.mxu1 %v54_v0  ;;  %v50_v5 = vld [vmem:[#allocation2 + $0x18] sm:$0xff]  ;;  %v47_v6 = vld [vmem:[#allocation2] sm:$0xff]  ;;  %v48_v7 = vld [vmem:[#allocation2 + $0x8] sm:$0xff]  ;;  %s110_s25 = sshll.u32 %s230_s24, 4  ;;  %s111_s25 = int_to_ptr.vmem [resolvable:$true] %s110_s25 }
   0xf   :  { %134 = vmatpush.msra.mxu2 %v53_v1  ;;  %135 = vmatpush.msra.mxu3 %v53_v1  ;;  %v147_v8 = vld [vmem:[%s278_s2] ss:$0 sm:$0xff] }
  0x10   :  { %85 = vmatpush.msra.mxu0 %v53_v1  ;;  %133 = vmatpush.msra.mxu1 %v53_v1 }
  0x11   :  { %137 = vmatpush.msra.mxu2 %v52_v2  ;;  %138 = vmatpush.msra.mxu3 %v52_v2 }
  0x12   :  { %86 = vmatpush.msra.mxu0 %v52_v2  ;;  %136 = vmatpush.msra.mxu1 %v52_v2 }
  0x13   :  { %140 = vmatpush.msra.mxu2 %v51_v3  ;;  %141 = vmatpush.msra.mxu3 %v51_v3 }
  0x14   :  { %128 = vmatmul.msk.f32.vlgmr.msra.gmra.mxu2 %vm59_vm0, %v49_v4  ;;  %129 = vmatmul.msk.f32.vlgmr.msra.gmra.mxu3 %vm59_vm0, %v50_v5 }
  0x15   :  { %87 = vmatpush.msra.mxu0 %v51_v3  ;;  %139 = vmatpush.msra.mxu1 %v51_v3 }
  0x16   :  { %126 = vmatmul.msk.f32.vlgmr.msra.gmra.mxu0 %vm59_vm0, %v47_v6  ;;  %127 = vmatmul.msk.f32.vlgmr.msra.gmra.mxu1 %vm59_vm0, %v48_v7 }
  0x93   :  { %v89_v9 = vpop.f32.mrf.mxu0  ;;  %v92_v10 = vpop.f32.mrf.mxu1 }
  0x94   :  { %v90_v11 = vadd.f32 %v147_v8, %v89_v9  ;;  %v93_v12 = vadd.f32 %v147_v8, %v92_v10 }
  0x96   :  { %102 = vst.msk [vmem:[#allocation7] sm:$0xff] %vm101_vm1, %v90_v11 }
  0x97   :  { %103 = vst.msk [vmem:[#allocation7 + $0x8] sm:$0xff] %vm101_vm1, %v93_v12  ;;  %v95_v13 = vpop.f32.mrf.mxu2  ;;  %v98_v14 = vpop.f32.mrf.mxu3 }
  0x98   :  { %v96_v15 = vadd.f32 %v147_v8, %v95_v13  ;;  %v99_v16 = vadd.f32 %v147_v8, %v98_v14 }
  0x9a   :  { %104 = vst.msk [vmem:[#allocation7 + $0x10] sm:$0xff] %vm101_vm1, %v96_v15 }
  0x9b   :  { %105 = vst.msk [vmem:[#allocation7 + $0x18] sm:$0xff] %vm101_vm1, %v99_v16 }
  0x9c   :  { %118 = dma.vmem_to_hbm [thread:$0]  %s111_s25, 512, %s113_s28, [#allocation4], %s227_s20, %s227_s20, %s228_s21  }
  0x9d   :  { %224 = dma.done.wait [#allocation4], 512  }
  0x9e   :  { %225 = vsyncadd [#allocation4], 4294966784 }
  0x9f   :  { %123 = vsyncpa [#allocation3], 1 }
  0xa0   :  { %124 = vsyncpa [#allocation6], 1 }
  0xa1   :  { %125 = vsyncpa [#allocation4], 1 }

</bundles_post_ra>
